<compile_context>
chip_gen: v6e
topology: v6e:2x2x1
jax: 0.10.0
libtpu: 0.0.40
codegen_flags: <defaults>
</compile_context>

<pallas_src>
import functools
import math

import jax
import jax.numpy as jnp
from jax.experimental import pallas as pl
from jax.experimental.pallas import tpu as pltpu

_LANE = 128


def _round_up(x, m):
    return ((x + m - 1) // m) * m


def _choose_tiles(N, tn_req, tk_req):
    """Pick (tn, tk, Np) with tn | tk | Np, everything 128-aligned."""
    tk = _round_up(min(tk_req, _round_up(N, _LANE)), _LANE)
    tn = _round_up(min(tn_req, tk), _LANE)
    # tn must divide tk so Np = round_up(N, tk) is divisible by both tiles.
    while tk % tn:
        tn -= _LANE
    Np = _round_up(N, tk)
    # Keep >= 2 dst tiles when possible so both v7x TensorCores get work.
    while Np // tn < 2 and tn % (2 * _LANE) == 0:
        tn //= 2
    return tn, tk, Np


def _gcn_kernel_resident(a_ref, xw_ref, b_ref, o_ref, acc_ref, *, tk):
    """XW fully resident in VMEM.  Grid = (dst tiles, src tiles)."""
    k = pl.program_id(1)

    @pl.when(k == 0)
    def _init():
        acc_ref[...] = jnp.zeros_like(acc_ref)

    off = pl.multiple_of(k * tk, tk)
    acc_ref[...] += jnp.dot(a_ref[...], xw_ref[pl.ds(off, tk), :],
                            preferred_element_type=jnp.float32)

    @pl.when(k == pl.num_programs(1) - 1)
    def _finalize():
        o_ref[...] = (acc_ref[...] + b_ref[...]).astype(o_ref.dtype)


def _gcn_kernel_streamed(a_ref, xw_ref, b_ref, o_ref, acc_ref):
    """XW streamed per src tile.  Grid = (dst tiles, src tiles)."""
    k = pl.program_id(1)

    @pl.when(k == 0)
    def _init():
        acc_ref[...] = jnp.zeros_like(acc_ref)

    acc_ref[...] += jnp.dot(a_ref[...], xw_ref[...],
                            preferred_element_type=jnp.float32)

    @pl.when(k == pl.num_programs(1) - 1)
    def _finalize():
        o_ref[...] = (acc_ref[...] + b_ref[...]).astype(o_ref.dtype)


def gcn_conv(adj, feature, weight, bias, *, tn=512, tk=1024,
             mxu_dtype=jnp.bfloat16):
    """GCNConv forward.

    adj     : (N, N)        A[dst, src] = edge weight (0 if no edge)
    feature : (N, F_in)
    weight  : (F_out, F_in) torch.nn.Linear.weight layout
    bias    : (F_out,)
    mxu_dtype: dtype streamed through HBM/MXU for A and XW (default bf16;
               pass jnp.float32 for a full-precision stream).  Accumulation
               is always f32.
    """
    N, F_in = feature.shape
    F_out = weight.shape[0]
    out_dtype = feature.dtype

    Fout_p = _round_up(F_out, _LANE)
    tn, tk, Np = _choose_tiles(N, tn, tk)

    stream_dtype = jnp.dtype(mxu_dtype if mxu_dtype is not None else adj.dtype)
    dsize = stream_dtype.itemsize
    out_dsize = jnp.dtype(out_dtype).itemsize

    # Fold the linear layer into the features:  XW = X @ W.T  (f32 compute,
    # then cast to the MXU stream dtype).  Bias is added after aggregation.
    xw = jnp.dot(feature.astype(jnp.float32), weight.T.astype(jnp.float32),
                 preferred_element_type=jnp.float32).astype(stream_dtype)
    if Np != N or Fout_p != F_out:
        xw = jnp.pad(xw, ((0, Np - N), (0, Fout_p - F_out)))

    adj_c = adj.astype(stream_dtype) if adj.dtype != stream_dtype else adj
    if Np != N:
        adj_c = jnp.pad(adj_c, ((0, Np - N), (0, Np - N)))

    bias_p = jnp.pad(bias.astype(jnp.float32),
                     (0, Fout_p - F_out)).reshape(1, Fout_p)

    # Keep the whole XW resident in VMEM when it is small (kills the
    # once-per-dst-tile re-stream of the features from HBM).
    resident_xw = (Np * Fout_p * dsize) <= (8 << 20)

    in_specs = [pl.BlockSpec((tn, tk), lambda i, k: (i, k))]        # A block
    if resident_xw:
        in_specs.append(pl.BlockSpec((Np, Fout_p), lambda i, k: (0, 0)))
        kernel = functools.partial(_gcn_kernel_resident, tk=tk)
        xw_vmem = Np * Fout_p * dsize
    else:
        in_specs.append(pl.BlockSpec((tk, Fout_p), lambda i, k: (k, 0)))
        kernel = _gcn_kernel_streamed
        xw_vmem = 2 * tk * Fout_p * dsize
    in_specs.append(pl.BlockSpec((1, Fout_p), lambda i, k: (0, 0)))  # bias

    out_spec = pl.BlockSpec((tn, Fout_p), lambda i, k: (i, 0))

    vmem_est = (2 * tn * tk * dsize          # A double-buffer (dominant)
                + xw_vmem                    # XW (resident or double-buffered)
                + Fout_p * 4                 # bias
                + 2 * tn * Fout_p * out_dsize  # output double-buffer
                + tn * Fout_p * 4)           # f32 accumulator scratch
    try:
        vmem_cap = int(pltpu.get_tpu_info().vmem_capacity_bytes) * 3 // 4
    except Exception:
        vmem_cap = 48 << 20                  # safe under v7x's 64 MiB per TC
    vmem_limit = int(min(max(2 * vmem_est, 32 << 20), vmem_cap))

    cost = pl.CostEstimate(
        flops=2 * Np * Np * Fout_p,
        transcendentals=0,
        bytes_accessed=int(Np * Np * dsize + Np * Fout_p * dsize
                           + Fout_p * 4 + Np * Fout_p * out_dsize),
    )

    out_p = pl.pallas_call(
        kernel,
        out_shape=jax.ShapeDtypeStruct((Np, Fout_p), out_dtype),
        grid_spec=pltpu.PrefetchScalarGridSpec(
            num_scalar_prefetch=0,
            grid=(Np // tn, Np // tk),
            in_specs=in_specs,
            out_specs=out_spec,
            scratch_shapes=[pltpu.VMEM((tn, Fout_p), jnp.float32)],
        ),
        compiler_params=pltpu.CompilerParams(
            dimension_semantics=("parallel", "arbitrary"),
            vmem_limit_bytes=vmem_limit,
        ),
        cost_estimate=cost,
    )(adj_c, xw, bias_p)

    return out_p[:N, :F_out]


def gcn_conv_ref(adj, feature, weight, bias):
    h = adj @ feature
    return h @ weight.T + bias


if __name__ == "__main__":
    key = jax.random.PRNGKey(0)
    k_adj, k_feat, k_w, k_b, k_mask = jax.random.split(key, 5)

    N = 512       # number of graph nodes
    F_in = 32     # in_feats
    F_out = 64    # out_feats

    # Deterministic synthetic weighted graph: A[dst, src] = edge weight.
    edge_w = jax.random.uniform(k_adj, (N, N), dtype=jnp.float32)
    edge_mask = (jax.random.uniform(k_mask, (N, N)) < 0.25).astype(jnp.float32)
    adj = edge_w * edge_mask

    feature = jax.random.normal(k_feat, (N, F_in), dtype=jnp.float32)

    # nn.Linear(in_feats, out_feats) parameters (deterministic init).
    bound = 1.0 / math.sqrt(F_in)
    weight = jax.random.uniform(k_w, (F_out, F_in), minval=-bound, maxval=bound,
                                dtype=jnp.float32)
    bias = jax.random.uniform(k_b, (F_out,), minval=-bound, maxval=bound,
                              dtype=jnp.float32)

    # Default path: bf16 MXU stream, f32 accumulation.
    out = gcn_conv(adj, feature, weight, bias)
    out = jax.block_until_ready(out)
    assert out.shape == (N, F_out)

    # Tight check against a reference with the same bf16 input quantization
    # (accumulation is f32 in both).
    xw_ref = feature @ weight.T
    ref_q = (adj.astype(jnp.bfloat16).astype(jnp.float32)
             @ xw_ref.astype(jnp.bfloat16).astype(jnp.float32)) + bias
    assert jnp.allclose(out, ref_q, atol=5e-3, rtol=5e-3)

    # Loose check against the full-precision reference (bf16 stream error).
    ref = gcn_conv_ref(adj, feature, weight, bias)
    assert jnp.allclose(out, ref, atol=5e-2, rtol=5e-2)

    print("KERNEL_OK")
</pallas_src>

<mosaic_0001>
module attributes {stable_mosaic.version = 11 : i64} {
  func.func @_gcn_kernel_resident(%arg0: i32, %arg1: i32, %arg2: memref<256x512xbf16, #tpu.memory_space<vmem>>, %arg3: memref<512x128xbf16, #tpu.memory_space<vmem>>, %arg4: memref<1x128xf32, #tpu.memory_space<vmem>>, %arg5: memref<256x128xf32, #tpu.memory_space<vmem>>, %arg6: memref<256x128xf32, #tpu.memory_space<vmem>>) attributes {dimension_semantics = [#tpu.dimension_semantics<parallel>, #tpu.dimension_semantics<arbitrary>], iteration_bounds = array<i64: 2, 1>, scalar_prefetch = 0 : i64, scratch_operands = 1 : i64, tpu.core_type = #tpu.core_type<tc>, window_params = [{transform_indices = @transform_0, window_bounds = array<i64: 256, 512>}, {pipeline_mode = #tpu.pipeline_mode<synchronous>, transform_indices = @transform_1, window_bounds = array<i64: 512, 128>}, {pipeline_mode = #tpu.pipeline_mode<synchronous>, transform_indices = @transform_2, window_bounds = array<i64: 1, 128>}, {transform_indices = @transform_3, window_bounds = array<i64: 256, 128>}]} {
    %c0_i32 = arith.constant 0 : i32
    %0 = arith.cmpi eq, %arg1, %c0_i32 : i32
    %1 = arith.extui %0 : i1 to i32
    %c0_i32_0 = arith.constant 0 : i32
    %2 = arith.cmpi ne, %1, %c0_i32_0 : i32
    scf.if %2 {
      %cst_9 = arith.constant 0.000000e+00 : f32
      %15 = vector.broadcast %cst_9 : f32 to vector<256x128xf32>
      %c0_10 = arith.constant 0 : index
      %c0_11 = arith.constant 0 : index
      %16 = vector.load %arg6[%c0_10, %c0_11] : memref<256x128xf32, #tpu.memory_space<vmem>>, vector<256x128xf32>
      tpu.vector_store %arg6[%c0_10, %c0_11], %15 {strides = array<i32>} : memref<256x128xf32, #tpu.memory_space<vmem>>, vector<256x128xf32>,
    } else {
    }
    %c512_i32 = arith.constant 512 : i32
    %3 = arith.muli %arg1, %c512_i32 : i32
    %4 = tpu.assume_multiple %3, 512 : i32
    %c0 = arith.constant 0 : index
    %c0_1 = arith.constant 0 : index
    %5 = vector.load %arg6[%c0, %c0_1] : memref<256x128xf32, #tpu.memory_space<vmem>>, vector<256x128xf32>
    %c0_2 = arith.constant 0 : index
    %c0_3 = arith.constant 0 : index
    %6 = vector.load %arg2[%c0_2, %c0_3] : memref<256x512xbf16, #tpu.memory_space<vmem>>, vector<256x512xbf16>
    %7 = arith.index_cast %4 : i32 to index
    %c0_4 = arith.constant 0 : index
    %8 = vector.load %arg3[%7, %c0_4] : memref<512x128xbf16, #tpu.memory_space<vmem>>, vector<512x128xbf16>
    %cst = arith.constant dense<0.000000e+00> : vector<256x128xf32>
    %9 = tpu.matmul %6, %8, %cst {dimension_numbers = #tpu.dot_dimension_numbers<[1], [0], [0], [1], [0, 0, 1, 1], [], []>} : vector<256x512xbf16>, vector<512x128xbf16>, vector<256x128xf32> -> vector<256x128xf32>
    %10 = arith.addf %5, %9 : vector<256x128xf32>
    %c0_5 = arith.constant 0 : index
    %c0_6 = arith.constant 0 : index
    %11 = vector.load %arg6[%c0_5, %c0_6] : memref<256x128xf32, #tpu.memory_space<vmem>>, vector<256x128xf32>
    tpu.vector_store %arg6[%c0_5, %c0_6], %10 {strides = array<i32>} : memref<256x128xf32, #tpu.memory_space<vmem>>, vector<256x128xf32>,
    %c0_i32_7 = arith.constant 0 : i32
    %12 = arith.cmpi eq, %arg1, %c0_i32_7 : i32
    %13 = arith.extui %12 : i1 to i32
    %c0_i32_8 = arith.constant 0 : i32
    %14 = arith.cmpi ne, %13, %c0_i32_8 : i32
    scf.if %14 {
      %c0_9 = arith.constant 0 : index
      %c0_10 = arith.constant 0 : index
      %15 = vector.load %arg6[%c0_9, %c0_10] : memref<256x128xf32, #tpu.memory_space<vmem>>, vector<256x128xf32>
      %c0_11 = arith.constant 0 : index
      %c0_12 = arith.constant 0 : index
      %16 = vector.load %arg4[%c0_11, %c0_12] : memref<1x128xf32, #tpu.memory_space<vmem>>, vector<1x128xf32>
      %17 = vector.broadcast %16 : vector<1x128xf32> to vector<256x128xf32>
      %18 = arith.addf %15, %17 : vector<256x128xf32>
      %c0_13 = arith.constant 0 : index
      %c0_14 = arith.constant 0 : index
      %19 = vector.load %arg5[%c0_13, %c0_14] : memref<256x128xf32, #tpu.memory_space<vmem>>, vector<256x128xf32>
      tpu.vector_store %arg5[%c0_13, %c0_14], %18 {strides = array<i32>} : memref<256x128xf32, #tpu.memory_space<vmem>>, vector<256x128xf32>,
    } else {
    }
    return
  }
  func.func @transform_0(%arg0: i32, %arg1: i32) -> (i32, i32) {
    %c0_i32 = arith.constant 0 : i32
    return %arg0, %arg1 : i32, i32
  }
  func.func @transform_1(%arg0: i32, %arg1: i32) -> (i32, i32) {
    %c0_i32 = arith.constant 0 : i32
    %c0_i32_0 = arith.constant 0 : i32
    %c0_i32_1 = arith.constant 0 : i32
    return %c0_i32, %c0_i32_0 : i32, i32
  }
  func.func @transform_2(%arg0: i32, %arg1: i32) -> (i32, i32) {
    %c0_i32 = arith.constant 0 : i32
    %c0_i32_0 = arith.constant 0 : i32
    %c0_i32_1 = arith.constant 0 : i32
    return %c0_i32, %c0_i32_0 : i32, i32
  }
  func.func @transform_3(%arg0: i32, %arg1: i32) -> (i32, i32) {
    %c0_i32 = arith.constant 0 : i32
    %c0_i32_0 = arith.constant 0 : i32
    return %arg0, %c0_i32 : i32, i32
  }
}

</mosaic_0001>

<bundles_post_ra>
// kernel: tpu_custom_call.1
= control target key start
LH: loop header
LB: loop body
LE: loop exit
PB: predicated region body
PF: predicated region fallthrough
CT: control target
= control target key end

     0   :  { %8 = vsyncpa [#allocation4], 0  ;;  %s2578_s0 = inlined_call_operand.hbm [shape: bf16[512,512], index: 0, kind: input, shape index: {}]   ;;  %s2579_s1 = inlined_call_operand.hbm [shape: bf16[512,128], index: 1, kind: input, shape index: {}]   ;;  %s2580_s2 = inlined_call_operand.vmem [shape: f32[1,128], index: 2, kind: input, shape index: {}]   ;;  %s2581_s3 = inlined_call_operand.hbm [shape: f32[512,128], index: 3, kind: output, shape index: {}]  }
   0x1   :  { %10 = vsyncpa [#allocation4 + $0x1], 0 }
   0x2   :  { %11 = vsyncpa [#allocation7], 0 }
   0x3   :  { %12 = vsyncpa [#allocation5], 0 }
   0x4   :  { %14 = vsyncpa [#allocation5 + $0x1], 0  ;;  %s2258_s12 = smov 0   ;;  %s2260_s13 = smov 0  }
   0x5   :  { %s2262_s14 = smov 0   ;;  %s2264_s15 = smov 0  }
   0x6   :  { %s2266_s16 = smov 0   ;;  %s2268_s17 = smov 0  }
   0x7 LB: > { %s1540_s18 = sadd.s32 4294967295, %s2227_s17   ;;  %s1541_s19 = sadd.s32 4294967294, %s2227_s17   ;;  %s2227_s17 = sphi %s2268_s17, %s20_s17   ;;  %s2223_s16 = sphi %s2266_s16, %s2599_s16   ;;  %s2219_s15 = sphi %s2264_s15, %s2598_s15   ;;  %s2215_s14 = sphi %s2262_s14, %s2597_s14   ;;  %s2211_s13 = sphi %s2260_s13, %s2596_s13   ;;  %s2207_s12 = sphi %s2258_s12, %s2595_s12  }
   0x8   : > { %p54_p0 = scmp.ne.s32.totalorder %s2211_s13, %s2207_s12  ;;  %p2292_p1 = scmp.eq.s32.totalorder %s1540_s18, 0 }
   0x9   : > { %p2296_p2 = scmp.eq.s32.totalorder %s1540_s18, 1  ;;  %p126_p3 = scmp.eq.s32.totalorder %s1541_s19, 1 }
   0xa   : > { %p2302_p4 = por %p2292_p1, %p54_p0  ;;  %p1542_p5 = scmp.ge.s32.totalorder %s2227_s17, 1 }
   0xb   : > { %p2307_p6 = por %p126_p3, %p54_p0  ;;  %p133_p7 = scmp.lt.s32.totalorder %s2227_s17, 3 }
   0xc   : > { %s2585_s22 = scalar_select %p2302_p4, 1, 0 }
   0xd   : > { %s2586_s23 = scalar_select %p2307_p6, 1, 0 }
   0xe   : > { %p2312_p8 = pnand %p1542_p5, %p133_p7  ;;  %s2229_s25 = smov [#allocation6]  }
   0xf   : > { %s145_s26 = sshll.u32 %s2229_s25, 4  ;;  %s32_s28 = sadd.s32 1, %s2223_s16  ;;  %s146_s26 = int_to_ptr.vmem [resolvable:$true] %s145_s26 }
  0x10   : > { %p1890_p9 = pneg %p2312_p8  ;;  %s2100_s29 = scalar_lea.vmem %s146_s26, 4096 }
  0x11   : > { %p2101_p13 = scmp.ne.s32.totalorder %s146_s26, %s2100_s29  ;;  %p2108_p5 = scmp.lt.s32.totalorder %s146_s26, %s146_s26 }
  0x12   : > { %p2321_p11 = pnand %p1890_p9, %p2292_p1  ;;  %p2109_p7 = scmp.lt.s32.totalorder %s2100_s29, %s2100_s29 }
  0x14   : > { %p2091_p12 = pneg %p2321_p11  ;;  %p2110_p6 = por %p2109_p7, %p2108_p5 }
  0x16   : > { %p2103_p0 = pnand %p2101_p13, %p2091_p12 }
  0x18   : > { %p2104_p3 = pneg %p2103_p0 }
  0x1a   : > { %p2111_p4 = pnand %p2110_p6, %p2104_p3 }
  0x1c   : > { %2114 = shalt.err (!%p2111_p4)
}
  0x1d   : > { %s2230_s30 = smov 64   ;;  %s2231_s4 = smov 4  }
  0x1e   : > { %1893 = dma.hbm_to_vmem [thread:$0]  (!%p2321_p11), %s2579_s1, 4096, %s146_s26, [#allocation7], %s2230_s30, %s2230_s30, %s2231_s4  }
  0x1f   : > { %p34_p6 = scmp.ge.s32.totalorder %s32_s28, 2  ;;  %s41_s7 = sadd.s32 1, %s2215_s14 }
  0x20   : > { %p48_p4 = scmp.ne.s32.totalorder %s2215_s14, %s2211_s13  ;;  %p49_p9 = scmp.eq.s32.totalorder %s2227_s17, 0 }
  0x21   : > { %s2601_s28 = smov (%p34_p6, %s32_s28), 0  ;;  %p1903_p0 = scmp.lt.s32.totalorder %s2227_s17, 2 }
  0x22   : > { %p2339_p12 = por %p49_p9, %p48_p4  ;;  %p2345_p13 = por %p2296_p2, %p48_p4 }
  0x23   : > { %s36_s10 = ssub.s32 %s2223_s16, %s2601_s28  ;;  %s162_s11 = sand.u32 1, %s2215_s14  }
  0x24   : > { %p39_p11 = scmp.eq.s32.totalorder %s36_s10, 0  ;;  %s1545_s18 = sshll.u32 %s162_s11, 9 }
  0x25   : > { %s1656_s25 = sshll.u32 %s2223_s16, 13  ;;  %s166_s30 = scalar_lea.vmem [#allocation3], %s1545_s18 }
  0x26   : > { %s2354_s19 = scalar_select %p39_p11, %s2215_s14, %s41_s7  }
  0x27   : > { %s175_s29 = scalar_lea.hbm %s2578_s0, %s1656_s25  ;;  %s176_s4 = sshll.u32 %s166_s30, 4  ;;  %s177_s4 = int_to_ptr.vmem [resolvable:$true] %s176_s4 }
  0x28   : > { %p2362_p2 = pnand %p1903_p0, %p2339_p12  ;;  %s163_s5 = scalar_lea.sflag [#allocation4], %s162_s11 }
  0x29   : > { %s2128_s6 = scalar_lea.vmem %s177_s4, 8192  ;;  %s2232_s7 = smov [#allocation3]  }
  0x2a   : > { %p2117_p3 = pneg %p2362_p2  ;;  %p2129_p5 = scmp.ne.s32.totalorder %s177_s4, %s2128_s6 }
  0x2b   : > { %s2133_s10 = sshll.u32 %s2232_s7, 4  ;;  %s2134_s10 = int_to_ptr.vmem [resolvable:$false] %s2133_s10 }
  0x2c   : > { %p2131_p7 = pnand %p2129_p5, %p2117_p3  ;;  %s2135_s25 = scalar_lea.vmem %s2134_s10, 16384 }
  0x2d   : > { %p2136_p4 = scmp.lt.s32.totalorder %s177_s4, %s2134_s10  ;;  %p2137_p9 = scmp.lt.s32.totalorder %s2135_s25, %s2128_s6 }
  0x2e   : > { %p2132_p6 = pneg %p2131_p7 }
  0x2f   : > { %p2138_p11 = por %p2137_p9, %p2136_p4 }
  0x31   : > { %p2139_p10 = pnand %p2138_p11, %p2132_p6 }
  0x33   : > { %2142 = shalt.err (!%p2139_p10)
}
  0x34   : > { %s2233_s8 = smov 256   ;;  %s2234_s18 = smov 16  }
  0x35   : > { %1897 = dma.hbm_to_vmem [thread:$0]  (!%p2362_p2), %s175_s29, 8192, %s177_s4, %s163_s5, %s2233_s8, %s2233_s8, %s2234_s18  }
  0x36   : > { %188 = sbr.rel (%p2312_p8) target bundleno = 436 (0x1b4), region = 32  ;;  %s2373_s11 = sand.u32 (!%p2312_p8), 1, %s2211_s13  }
  0x37   : > { %s1550_s26 = sshll.u32 (!%p2312_p8), %s2373_s11, 9  ;;  %s191_s27 = scalar_lea.sflag (!%p2312_p8), [#allocation4], %s2373_s11 }
  0x38   : > { %s2377_s30 = scalar_lea.vmem (!%p2312_p8), [#allocation3], %s1550_s26  ;;  %p2592_p12 = scmp.ne.s32.totalorder (!%p2312_p8), %s2585_s22, 0 }
  0x3b   : > { %2194 = dma.done.wait (%p2592_p12), %s191_s27, 8192  }
  0x3c   : > { %2196 = vsyncadd (%p2592_p12), %s191_s27, 4294959104 }
  0x3d   : > { %2198 = dma.done.wait (%p2292_p1), [#allocation7], 4096  }
  0x3e   : > { %2200 = vsyncadd (%p2292_p1), [#allocation7], 4294963200  ;;  %v1961_v0 = vld [vmem:[#allocation6 + $0x78] sm:$0xff]   ;;  %v1965_v4 = vld [vmem:[#allocation6 + $0x70] sm:$0xff]   ;;  %s1552_s20 = sshll.u32 %s2373_s11, 8  ;;  %s1657_s4 = sshll.u32 %s2219_s15, 12 }
  0x3f   : > { %v1962_v1 = vld [vmem:[#allocation6 + $0xf8] sm:$0xff]   ;;  %1658 = vmatprep.subr.bf16.mxu0 %v1961_v0  ;;  %v1966_v5 = vld [vmem:[#allocation6 + $0xf0] sm:$0xff]   ;;  %v1969_v8 = vld [vmem:[#allocation6 + $0x68] sm:$0xff]   ;;  %s2458_s29 = scalar_lea.vmem [#allocation8], %s1552_s20  ;;  %s2526_s7 = scalar_lea.hbm %s2581_s3, %s1657_s4 }
  0x40   : > { %v1963_v2 = vld [vmem:[#allocation6 + $0x38] sm:$0xff]   ;;  %1770 = vmatprep.subr.bf16.mxu1 %v1962_v1  ;;  %v1967_v6 = vld [vmem:[#allocation6 + $0x30] sm:$0xff]   ;;  %v1970_v9 = vld [vmem:[#allocation6 + $0xe8] sm:$0xff]   ;;  %s1444_s21 = sshll.u32 %s2458_s29, 4  ;;  %s1431_s10 = scalar_lea.sflag [#allocation5], %s2373_s11  ;;  %s2528_s21 = int_to_ptr.vmem [resolvable:$true] %s1444_s21 }
  0x41   : > { %v1964_v3 = vld [vmem:[#allocation6 + $0xb8] sm:$0xff]   ;;  %1659 = vmatpush3.bf16.msra.mxu0 %v1963_v2  ;;  %v1968_v7 = vld [vmem:[#allocation6 + $0xb0] sm:$0xff]   ;;  %v1971_v10 = vld [vmem:[#allocation6 + $0x28] sm:$0xff]   ;;  %s2143_s25 = scalar_lea.vmem %s2528_s21, 4096  ;;  %s2235_s15 = smov [#allocation8]  }
  0x42   : > { %1771 = vmatpush3.bf16.msra.mxu1 %v1964_v3  ;;  %1660 = vmatprep.subr.bf16.mxu0 %v1965_v4  ;;  %v1972_v11 = vld [vmem:[#allocation6 + $0xa8] sm:$0xff]   ;;  %v1973_v12 = vld [vmem:[#allocation6 + $0x60] sm:$0xff]   ;;  %v1977_v16 = vld [vmem:[#allocation6 + $0x58] sm:$0xff]   ;;  %p2144_p1 = scmp.ne.s32.totalorder %s2528_s21, %s2143_s25  ;;  %s2147_s8 = sshll.u32 %s2235_s15, 4  ;;  %s2148_s8 = int_to_ptr.vmem [resolvable:$false] %s2147_s8 }
  0x43   : > { %1772 = vmatprep.subr.bf16.mxu1 %v1966_v5  ;;  %v1974_v13 = vld [vmem:[#allocation6 + $0xe0] sm:$0xff]   ;;  %v1978_v17 = vld [vmem:[#allocation6 + $0xd8] sm:$0xff]   ;;  %v1981_v20 = vld [vmem:[#allocation6 + $0x50] sm:$0xff]   ;;  %s2149_s18 = scalar_lea.vmem %s2148_s8, 8192  ;;  %p2150_p0 = scmp.lt.s32.totalorder %s2528_s21, %s2148_s8 }
  0x44   : > { %v1975_v14 = vld [vmem:[#allocation6 + $0x20] sm:$0xff]   ;;  %v1979_v18 = vld [vmem:[#allocation6 + $0x18] sm:$0xff]   ;;  %v1982_v21 = vld [vmem:[#allocation6 + $0xd0] sm:$0xff]   ;;  %p2145_p8 = pnand %p2144_p1, %p2345_p13  ;;  %p2151_p2 = scmp.lt.s32.totalorder %s2149_s18, %s2143_s25 }
  0x45   : > { %1661 = vmatpush3.bf16.msra.mxu0 %v1967_v6  ;;  %v1976_v15 = vld [vmem:[#allocation6 + $0xa0] sm:$0xff]   ;;  %v1980_v19 = vld [vmem:[#allocation6 + $0x98] sm:$0xff]   ;;  %v1983_v22 = vld [vmem:[#allocation6 + $0x10] sm:$0xff]  }
  0x46   : > { %1773 = vmatpush3.bf16.msra.mxu1 %v1968_v7  ;;  %1662 = vmatprep.subr.bf16.mxu0 %v1969_v8  ;;  %v1984_v23 = vld [vmem:[#allocation6 + $0x90] sm:$0xff]   ;;  %v1985_v24 = vld [vmem:[#allocation6 + $0x48] sm:$0xff]   ;;  %v1989_v28 = vld [vmem:[#allocation6 + $0x40] sm:$0xff]   ;;  %p2146_p10 = pneg %p2145_p8  ;;  %p2152_p3 = por %p2151_p2, %p2150_p0 }
  0x47   : > { %1774 = vmatprep.subr.bf16.mxu1 %v1970_v9  ;;  %v1986_v25 = vld [vmem:[#allocation6 + $0xc8] sm:$0xff]   ;;  %v1990_v29 = vld [vmem:[#allocation6 + $0xc0] sm:$0xff]  }
  0x48   : > { %v1987_v26 = vld [vmem:[#allocation6 + $0x8] sm:$0xff]   ;;  %v1991_v30 = vld [vmem:[#allocation6] sm:$0xff]   ;;  %p2153_p5 = pnand %p2152_p3, %p2146_p10 }
  0x49   : > { %1663 = vmatpush3.bf16.msra.mxu0 %v1971_v10  ;;  %v1988_v27 = vld [vmem:[#allocation6 + $0x88] sm:$0xff]   ;;  %v1992_v31 = vld [vmem:[#allocation6 + $0x80] sm:$0xff]  }
  0x4a   : > { %1775 = vmatpush3.bf16.msra.mxu1 %v1972_v11  ;;  %1664 = vmatprep.subr.bf16.mxu0 %v1973_v12  ;;  %v1993_v32 = vld [vmem:[%s2377_s30] ss:$16 sps:$4 sm:$0xff]   ;;  %v1995_v33 = vld [vmem:[%s2377_s30 + $0x4] ss:$16 sps:$4 sm:$0xff]   ;;  %v1996_v34 = vld [vmem:[%s2377_s30 + $0x8] ss:$16 sps:$4 sm:$0xff]  }
  0x4b   : > { %1776 = vmatprep.subr.bf16.mxu1 %v1974_v13  ;;  %v1998_v35 = vld [vmem:[%s2377_s30 + $0xc] ss:$16 sps:$4 sm:$0xff]   ;;  %970 = vmatprep.mubr.bf16.mxu0 %v1995_v33  ;;  %v1999_v36 = vld [vmem:[%s2377_s30 + $0x24] ss:$16 sps:$4 sm:$0xff]   ;;  %v2003_v38 = vld [vmem:[%s2377_s30 + $0x20] ss:$16 sps:$4 sm:$0xff]  }
  0x4c   : > { %1131 = vmatprep.mubr.bf16.mxu1 %v1998_v35  ;;  %v2001_v37 = vld [vmem:[%s2377_s30 + $0x2c] ss:$16 sps:$4 sm:$0xff]   ;;  %v2004_v39 = vld [vmem:[%s2377_s30 + $0x28] ss:$16 sps:$4 sm:$0xff]   ;;  %v2005_v40 = vld [vmem:[%s2377_s30 + $0x44] ss:$16 sps:$4 sm:$0xff]  }
  0x4d   : > { %1665 = vmatpush3.bf16.msra.mxu0 %v1975_v14  ;;  %v2007_v41 = vld [vmem:[%s2377_s30 + $0x4c] ss:$16 sps:$4 sm:$0xff]   ;;  %v2009_v42 = vld [vmem:[%s2377_s30 + $0x40] ss:$16 sps:$4 sm:$0xff]   ;;  %v2010_v43 = vld [vmem:[%s2377_s30 + $0x48] ss:$16 sps:$4 sm:$0xff]  }
  0x4e   : > { %1777 = vmatpush3.bf16.msra.mxu1 %v1976_v15  ;;  %1666 = vmatprep.subr.bf16.mxu0 %v1977_v16  ;;  %v2011_v44 = vld [vmem:[%s2377_s30 + $0x64] ss:$16 sps:$4 sm:$0xff]   ;;  %v2013_v45 = vld [vmem:[%s2377_s30 + $0x6c] ss:$16 sps:$4 sm:$0xff]   ;;  %v2015_v46 = vld [vmem:[%s2377_s30 + $0x60] ss:$16 sps:$4 sm:$0xff]  }
  0x4f   : > { %1778 = vmatprep.subr.bf16.mxu1 %v1978_v17  ;;  %v2016_v47 = vld [vmem:[%s2377_s30 + $0x68] ss:$16 sps:$4 sm:$0xff]   ;;  %v2017_v48 = vld [vmem:[%s2377_s30 + $0x84] ss:$16 sps:$4 sm:$0xff]   ;;  %v2019_v49 = vld [vmem:[%s2377_s30 + $0x8c] ss:$16 sps:$4 sm:$0xff]  }
  0x50   : > { %v2021_v50 = vld [vmem:[%s2377_s30 + $0x80] ss:$16 sps:$4 sm:$0xff]   ;;  %v2022_v51 = vld [vmem:[%s2377_s30 + $0x88] ss:$16 sps:$4 sm:$0xff]   ;;  %v2023_v52 = vld [vmem:[%s2377_s30 + $0xa4] ss:$16 sps:$4 sm:$0xff]  }
  0x51   : > { %1667 = vmatpush3.bf16.msra.mxu0 %v1979_v18  ;;  %v2025_v53 = vld [vmem:[%s2377_s30 + $0xac] ss:$16 sps:$4 sm:$0xff]   ;;  %v2027_v54 = vld [vmem:[%s2377_s30 + $0xa0] ss:$16 sps:$4 sm:$0xff]   ;;  %v2028_v55 = vld [vmem:[%s2377_s30 + $0xa8] ss:$16 sps:$4 sm:$0xff]  }
  0x52   : > { %1779 = vmatpush3.bf16.msra.mxu1 %v1980_v19  ;;  %1668 = vmatprep.subr.bf16.mxu0 %v1981_v20  ;;  %v2029_v56 = vld [vmem:[%s2377_s30 + $0xc4] ss:$16 sps:$4 sm:$0xff]   ;;  %v2031_v57 = vld [vmem:[%s2377_s30 + $0xcc] ss:$16 sps:$4 sm:$0xff]   ;;  %v2033_v58 = vld [vmem:[%s2377_s30 + $0xc0] ss:$16 sps:$4 sm:$0xff]  }
  0x53   : > { %1780 = vmatprep.subr.bf16.mxu1 %v1982_v21  ;;  %v2034_v59 = vld [vmem:[%s2377_s30 + $0xc8] ss:$16 sps:$4 sm:$0xff]   ;;  %v2035_v60 = vld [vmem:[%s2377_s30 + $0xe4] ss:$16 sps:$4 sm:$0xff]   ;;  %v2037_v61 = vld [vmem:[%s2377_s30 + $0xec] ss:$16 sps:$4 sm:$0xff]  }
  0x54   : > { %v2039_v62 = vld [vmem:[%s2377_s30 + $0xe0] ss:$16 sps:$4 sm:$0xff]   ;;  %v2040_v63 = vld [vmem:[%s2377_s30 + $0xe8] ss:$16 sps:$4 sm:$0xff]   ;;  %v2041_v0 = vld [vmem:[%s2377_s30 + $0x104] ss:$16 sps:$4 sm:$0xff]  }
  0x55   : > { %1669 = vmatpush3.bf16.msra.mxu0 %v1983_v22  ;;  %v2043_v1 = vld [vmem:[%s2377_s30 + $0x10c] ss:$16 sps:$4 sm:$0xff]   ;;  %v2045_v2 = vld [vmem:[%s2377_s30 + $0x100] ss:$16 sps:$4 sm:$0xff]   ;;  %v2046_v3 = vld [vmem:[%s2377_s30 + $0x108] ss:$16 sps:$4 sm:$0xff]  }
  0x56   : > { %1781 = vmatpush3.bf16.msra.mxu1 %v1984_v23  ;;  %1670 = vmatprep.subr.bf16.mxu0 %v1985_v24  ;;  %v2047_v4 = vld [vmem:[%s2377_s30 + $0x124] ss:$16 sps:$4 sm:$0xff]   ;;  %v2049_v5 = vld [vmem:[%s2377_s30 + $0x12c] ss:$16 sps:$4 sm:$0xff]   ;;  %v2051_v6 = vld [vmem:[%s2377_s30 + $0x120] ss:$16 sps:$4 sm:$0xff]  }
  0x57   : > { %1782 = vmatprep.subr.bf16.mxu1 %v1986_v25  ;;  %v2052_v7 = vld [vmem:[%s2377_s30 + $0x128] ss:$16 sps:$4 sm:$0xff]   ;;  %v2053_v8 = vld [vmem:[%s2377_s30 + $0x144] ss:$16 sps:$4 sm:$0xff]   ;;  %v2055_v9 = vld [vmem:[%s2377_s30 + $0x14c] ss:$16 sps:$4 sm:$0xff]  }
  0x58   : > { %v2057_v10 = vld [vmem:[%s2377_s30 + $0x140] ss:$16 sps:$4 sm:$0xff]   ;;  %v2058_v11 = vld [vmem:[%s2377_s30 + $0x148] ss:$16 sps:$4 sm:$0xff]   ;;  %v2059_v12 = vld [vmem:[%s2377_s30 + $0x164] ss:$16 sps:$4 sm:$0xff]  }
  0x59   : > { %1671 = vmatpush3.bf16.msra.mxu0 %v1987_v26  ;;  %v2061_v13 = vld [vmem:[%s2377_s30 + $0x16c] ss:$16 sps:$4 sm:$0xff]   ;;  %v2063_v14 = vld [vmem:[%s2377_s30 + $0x160] ss:$16 sps:$4 sm:$0xff]   ;;  %v2064_v15 = vld [vmem:[%s2377_s30 + $0x168] ss:$16 sps:$4 sm:$0xff]  }
  0x5a   : > { %1783 = vmatpush3.bf16.msra.mxu1 %v1988_v27  ;;  %1672 = vmatprep.subr.bf16.mxu0 %v1989_v28  ;;  %v2065_v16 = vld [vmem:[%s2377_s30 + $0x184] ss:$16 sps:$4 sm:$0xff]   ;;  %v2067_v17 = vld [vmem:[%s2377_s30 + $0x18c] ss:$16 sps:$4 sm:$0xff]   ;;  %v2069_v18 = vld [vmem:[%s2377_s30 + $0x180] ss:$16 sps:$4 sm:$0xff]  }
  0x5b   : > { %1784 = vmatprep.subr.bf16.mxu1 %v1990_v29  ;;  %v2070_v19 = vld [vmem:[%s2377_s30 + $0x188] ss:$16 sps:$4 sm:$0xff]   ;;  %v2071_v20 = vld [vmem:[%s2377_s30 + $0x1a4] ss:$16 sps:$4 sm:$0xff]   ;;  %v2073_v21 = vld [vmem:[%s2377_s30 + $0x1ac] ss:$16 sps:$4 sm:$0xff]  }
  0x5c   : > { %v2075_v22 = vld [vmem:[%s2377_s30 + $0x1a0] ss:$16 sps:$4 sm:$0xff]   ;;  %v2076_v23 = vld [vmem:[%s2377_s30 + $0x1a8] ss:$16 sps:$4 sm:$0xff]   ;;  %v2077_v24 = vld [vmem:[%s2377_s30 + $0x1c4] ss:$16 sps:$4 sm:$0xff]  }
  0x5d   : > { %1673 = vmatpush3.bf16.msra.mxu0 %v1991_v30  ;;  %v2079_v25 = vld [vmem:[%s2377_s30 + $0x1cc] ss:$16 sps:$4 sm:$0xff]   ;;  %v2081_v26 = vld [vmem:[%s2377_s30 + $0x1c0] ss:$16 sps:$4 sm:$0xff]   ;;  %v2082_v27 = vld [vmem:[%s2377_s30 + $0x1c8] ss:$16 sps:$4 sm:$0xff]  }
  0x5e   : > { %1785 = vmatpush3.bf16.msra.mxu1 %v1992_v31  ;;  %v2083_v28 = vld [vmem:[%s2377_s30 + $0x1e4] ss:$16 sps:$4 sm:$0xff]   ;;  %v2085_v29 = vld [vmem:[%s2377_s30 + $0x1ec] ss:$16 sps:$4 sm:$0xff]   ;;  %v2087_v30 = vld [vmem:[%s2377_s30 + $0x1e0] ss:$16 sps:$4 sm:$0xff]  }
  0x5f   : > { %v2088_v31 = vld [vmem:[%s2377_s30 + $0x1e8] ss:$16 sps:$4 sm:$0xff]  }
  0x60   : > { %971 = vmatmul.mubr.bf16.vlgmr.msra.gmra.mxu0 %v1993_v32 }
  0x61   : > { %1132 = vmatmul.mubr.bf16.vlgmr.msra.gmra.mxu1 %v1996_v34  ;;  %978 = vmatprep.mubr.bf16.mxu0 %v1999_v36 }
  0x62   : > { %1139 = vmatprep.mubr.bf16.mxu1 %v2001_v37 }
  0x68   : > { %979 = vmatmul.mubr.bf16.gmra.mxu0 %v2003_v38 }
  0x69   : > { %1140 = vmatmul.mubr.bf16.gmra.mxu1 %v2004_v39  ;;  %986 = vmatprep.mubr.bf16.mxu0 %v2005_v40  ;;  %v2455_v39 = vld [vmem:[%s2580_s2] ss:$0 sm:$0xff] }
  0x6a   : > { %1147 = vmatprep.mubr.bf16.mxu1 %v2007_v41 }
  0x70   : > { %987 = vmatmul.mubr.bf16.gmra.mxu0 %v2009_v42 }
  0x71   : > { %1148 = vmatmul.mubr.bf16.gmra.mxu1 %v2010_v43  ;;  %994 = vmatprep.mubr.bf16.mxu0 %v2011_v44 }
  0x72   : > { %1155 = vmatprep.mubr.bf16.mxu1 %v2013_v45 }
  0x78   : > { %995 = vmatmul.mubr.bf16.gmra.mxu0 %v2015_v46 }
  0x79   : > { %1156 = vmatmul.mubr.bf16.gmra.mxu1 %v2016_v47  ;;  %1002 = vmatprep.mubr.bf16.mxu0 %v2017_v48 }
  0x7a   : > { %1163 = vmatprep.mubr.bf16.mxu1 %v2019_v49 }
  0x80   : > { %1003 = vmatmul.mubr.bf16.gmra.mxu0 %v2021_v50 }
  0x81   : > { %1164 = vmatmul.mubr.bf16.gmra.mxu1 %v2022_v51  ;;  %1010 = vmatprep.mubr.bf16.mxu0 %v2023_v52 }
  0x82   : > { %1171 = vmatprep.mubr.bf16.mxu1 %v2025_v53 }
  0x88   : > { %1011 = vmatmul.mubr.bf16.gmra.mxu0 %v2027_v54 }
  0x89   : > { %1172 = vmatmul.mubr.bf16.gmra.mxu1 %v2028_v55  ;;  %1018 = vmatprep.mubr.bf16.mxu0 %v2029_v56 }
  0x8a   : > { %1179 = vmatprep.mubr.bf16.mxu1 %v2031_v57 }
  0x90   : > { %1019 = vmatmul.mubr.bf16.gmra.mxu0 %v2033_v58 }
  0x91   : > { %1180 = vmatmul.mubr.bf16.gmra.mxu1 %v2034_v59  ;;  %1026 = vmatprep.mubr.bf16.mxu0 %v2035_v60 }
  0x92   : > { %1187 = vmatprep.mubr.bf16.mxu1 %v2037_v61 }
  0x98   : > { %1027 = vmatmul.mubr.bf16.gmra.mxu0 %v2039_v62 }
  0x99   : > { %1188 = vmatmul.mubr.bf16.gmra.mxu1 %v2040_v63  ;;  %1034 = vmatprep.mubr.bf16.mxu0 %v2041_v0 }
  0x9a   : > { %1195 = vmatprep.mubr.bf16.mxu1 %v2043_v1 }
  0xa0   : > { %1035 = vmatmul.mubr.bf16.gmra.mxu0 %v2045_v2 }
  0xa1   : > { %1196 = vmatmul.mubr.bf16.gmra.mxu1 %v2046_v3  ;;  %1042 = vmatprep.mubr.bf16.mxu0 %v2047_v4 }
  0xa2   : > { %1203 = vmatprep.mubr.bf16.mxu1 %v2049_v5 }
  0xa8   : > { %1043 = vmatmul.mubr.bf16.gmra.mxu0 %v2051_v6 }
  0xa9   : > { %1204 = vmatmul.mubr.bf16.gmra.mxu1 %v2052_v7  ;;  %1050 = vmatprep.mubr.bf16.mxu0 %v2053_v8 }
  0xaa   : > { %1211 = vmatprep.mubr.bf16.mxu1 %v2055_v9 }
  0xb0   : > { %1051 = vmatmul.mubr.bf16.gmra.mxu0 %v2057_v10 }
  0xb1   : > { %1212 = vmatmul.mubr.bf16.gmra.mxu1 %v2058_v11  ;;  %1058 = vmatprep.mubr.bf16.mxu0 %v2059_v12 }
  0xb2   : > { %1219 = vmatprep.mubr.bf16.mxu1 %v2061_v13 }
  0xb8   : > { %1059 = vmatmul.mubr.bf16.gmra.mxu0 %v2063_v14 }
  0xb9   : > { %1220 = vmatmul.mubr.bf16.gmra.mxu1 %v2064_v15  ;;  %1066 = vmatprep.mubr.bf16.mxu0 %v2065_v16 }
  0xba   : > { %1227 = vmatprep.mubr.bf16.mxu1 %v2067_v17 }
  0xc0   : > { %1067 = vmatmul.mubr.bf16.gmra.mxu0 %v2069_v18 }
  0xc1   : > { %1228 = vmatmul.mubr.bf16.gmra.mxu1 %v2070_v19  ;;  %1074 = vmatprep.mubr.bf16.mxu0 %v2071_v20 }
  0xc2   : > { %1235 = vmatprep.mubr.bf16.mxu1 %v2073_v21 }
  0xc8   : > { %1075 = vmatmul.mubr.bf16.gmra.mxu0 %v2075_v22 }
  0xc9   : > { %1236 = vmatmul.mubr.bf16.gmra.mxu1 %v2076_v23  ;;  %1082 = vmatprep.mubr.bf16.mxu0 %v2077_v24 }
  0xca   : > { %1243 = vmatprep.mubr.bf16.mxu1 %v2079_v25 }
  0xd0   : > { %1083 = vmatmul.mubr.bf16.gmra.mxu0 %v2081_v26 }
  0xd1   : > { %1244 = vmatmul.mubr.bf16.gmra.mxu1 %v2082_v27  ;;  %1090 = vmatprep.mubr.bf16.mxu0 %v2083_v28 }
  0xd2   : > { %1251 = vmatprep.mubr.bf16.mxu1 %v2085_v29 }
  0xd8   : > { %1091 = vmatmul.mubr.bf16.gmra.mxu0 %v2087_v30 }
  0xd9   : > { %1252 = vmatmul.mubr.bf16.gmra.mxu1 %v2088_v31 }
 0x120   : > { %v1674_v32 = vpop.f32.mrf.mxu0 }
 0x121   : > { %v1786_v33 = vpop.f32.mrf.mxu1 }
 0x122   : > { %v1675_v34 = vpop.f32.mrf.mxu0 }
 0x123   : > { %v1676_v35 = vadd.f32 %v1675_v34, %v1674_v32  ;;  %v1787_v36 = vpop.f32.mrf.mxu1 }
 0x124   : > { %v1788_v37 = vadd.f32 %v1787_v36, %v1786_v33  ;;  %v1677_v38 = vpop.f32.mrf.mxu0 }
 0x125   : > { %v1789_v40 = vpop.f32.mrf.mxu1 }
 0x126   : > { %v1134_v41 = vadd.f32 %v1788_v37, %v1676_v35  ;;  %v1678_v42 = vpop.f32.mrf.mxu0 }
 0x127   : > { %v1679_v43 = vadd.f32 %v1678_v42, %v1677_v38  ;;  %v1790_v44 = vpop.f32.mrf.mxu1 }
 0x128   : > { %v1366_v45 = vadd.f32 %v2455_v39, %v1134_v41  ;;  %v1791_v46 = vadd.f32 %v1790_v44, %v1789_v40  ;;  %v1680_v47 = vpop.f32.mrf.mxu0 }
 0x129   : > { %v1792_v48 = vpop.f32.mrf.mxu1 }
 0x12a   : > { %1398 = vst [vmem:[%s2458_s29] sm:$0xff] %v1366_v45  ;;  %v1137_v49 = vadd.f32 %v1791_v46, %v1679_v43  ;;  %v1681_v50 = vpop.f32.mrf.mxu0 }
 0x12b   : > { %v1682_v51 = vadd.f32 %v1681_v50, %v1680_v47  ;;  %v1793_v52 = vpop.f32.mrf.mxu1 }
 0x12c   : > { %v1367_v53 = vadd.f32 %v2455_v39, %v1137_v49  ;;  %v1794_v54 = vadd.f32 %v1793_v52, %v1792_v48  ;;  %v1683_v55 = vpop.f32.mrf.mxu0 }
 0x12d   : > { %v1795_v56 = vpop.f32.mrf.mxu1 }
 0x12e   : > { %1399 = vst [vmem:[%s2458_s29 + $0x8] sm:$0xff] %v1367_v53  ;;  %v1142_v57 = vadd.f32 %v1794_v54, %v1682_v51  ;;  %v1684_v58 = vpop.f32.mrf.mxu0 }
 0x12f   : > { %v1685_v59 = vadd.f32 %v1684_v58, %v1683_v55  ;;  %v1796_v60 = vpop.f32.mrf.mxu1 }
 0x130   : > { %v1368_v61 = vadd.f32 %v2455_v39, %v1142_v57  ;;  %v1797_v62 = vadd.f32 %v1796_v60, %v1795_v56  ;;  %v1686_v63 = vpop.f32.mrf.mxu0 }
 0x131   : > { %v1798_v0 = vpop.f32.mrf.mxu1 }
 0x132   : > { %1400 = vst [vmem:[%s2458_s29 + $0x10] sm:$0xff] %v1368_v61  ;;  %v1145_v1 = vadd.f32 %v1797_v62, %v1685_v59  ;;  %v1687_v2 = vpop.f32.mrf.mxu0 }
 0x133   : > { %v1688_v3 = vadd.f32 %v1687_v2, %v1686_v63  ;;  %v1799_v4 = vpop.f32.mrf.mxu1 }
 0x134   : > { %v1369_v5 = vadd.f32 %v2455_v39, %v1145_v1  ;;  %v1800_v6 = vadd.f32 %v1799_v4, %v1798_v0  ;;  %v1689_v7 = vpop.f32.mrf.mxu0 }
 0x135   : > { %v1801_v8 = vpop.f32.mrf.mxu1 }
 0x136   : > { %1401 = vst [vmem:[%s2458_s29 + $0x18] sm:$0xff] %v1369_v5  ;;  %v1150_v9 = vadd.f32 %v1800_v6, %v1688_v3  ;;  %v1690_v10 = vpop.f32.mrf.mxu0 }
 0x137   : > { %v1691_v11 = vadd.f32 %v1690_v10, %v1689_v7  ;;  %v1802_v12 = vpop.f32.mrf.mxu1 }
 0x138   : > { %v1370_v13 = vadd.f32 %v2455_v39, %v1150_v9  ;;  %v1803_v14 = vadd.f32 %v1802_v12, %v1801_v8  ;;  %v1692_v15 = vpop.f32.mrf.mxu0 }
 0x139   : > { %v1804_v16 = vpop.f32.mrf.mxu1 }
 0x13a   : > { %1402 = vst [vmem:[%s2458_s29 + $0x20] sm:$0xff] %v1370_v13  ;;  %v1153_v17 = vadd.f32 %v1803_v14, %v1691_v11  ;;  %v1693_v18 = vpop.f32.mrf.mxu0 }
 0x13b   : > { %v1694_v19 = vadd.f32 %v1693_v18, %v1692_v15  ;;  %v1805_v20 = vpop.f32.mrf.mxu1 }
 0x13c   : > { %v1371_v21 = vadd.f32 %v2455_v39, %v1153_v17  ;;  %v1806_v22 = vadd.f32 %v1805_v20, %v1804_v16  ;;  %v1695_v23 = vpop.f32.mrf.mxu0 }
 0x13d   : > { %v1807_v24 = vpop.f32.mrf.mxu1 }
 0x13e   : > { %1403 = vst [vmem:[%s2458_s29 + $0x28] sm:$0xff] %v1371_v21  ;;  %v1158_v25 = vadd.f32 %v1806_v22, %v1694_v19  ;;  %v1696_v26 = vpop.f32.mrf.mxu0 }
 0x13f   : > { %v1697_v27 = vadd.f32 %v1696_v26, %v1695_v23  ;;  %v1808_v28 = vpop.f32.mrf.mxu1 }
 0x140   : > { %v1372_v29 = vadd.f32 %v2455_v39, %v1158_v25  ;;  %v1809_v30 = vadd.f32 %v1808_v28, %v1807_v24  ;;  %v1698_v31 = vpop.f32.mrf.mxu0 }
 0x141   : > { %v1810_v32 = vpop.f32.mrf.mxu1 }
 0x142   : > { %1404 = vst [vmem:[%s2458_s29 + $0x30] sm:$0xff] %v1372_v29  ;;  %v1161_v33 = vadd.f32 %v1809_v30, %v1697_v27  ;;  %v1699_v34 = vpop.f32.mrf.mxu0 }
 0x143   : > { %v1700_v35 = vadd.f32 %v1699_v34, %v1698_v31  ;;  %v1811_v36 = vpop.f32.mrf.mxu1 }
 0x144   : > { %v1373_v37 = vadd.f32 %v2455_v39, %v1161_v33  ;;  %v1812_v38 = vadd.f32 %v1811_v36, %v1810_v32  ;;  %v1701_v40 = vpop.f32.mrf.mxu0 }
 0x145   : > { %v1813_v41 = vpop.f32.mrf.mxu1 }
 0x146   : > { %1405 = vst [vmem:[%s2458_s29 + $0x38] sm:$0xff] %v1373_v37  ;;  %v1166_v42 = vadd.f32 %v1812_v38, %v1700_v35  ;;  %v1702_v43 = vpop.f32.mrf.mxu0 }
 0x147   : > { %v1703_v44 = vadd.f32 %v1702_v43, %v1701_v40  ;;  %v1814_v45 = vpop.f32.mrf.mxu1 }
 0x148   : > { %v1374_v46 = vadd.f32 %v2455_v39, %v1166_v42  ;;  %v1815_v47 = vadd.f32 %v1814_v45, %v1813_v41  ;;  %v1704_v48 = vpop.f32.mrf.mxu0 }
 0x149   : > { %v1816_v49 = vpop.f32.mrf.mxu1 }
 0x14a   : > { %1406 = vst [vmem:[%s2458_s29 + $0x40] sm:$0xff] %v1374_v46  ;;  %v1169_v50 = vadd.f32 %v1815_v47, %v1703_v44  ;;  %v1705_v51 = vpop.f32.mrf.mxu0 }
 0x14b   : > { %v1706_v52 = vadd.f32 %v1705_v51, %v1704_v48  ;;  %v1817_v53 = vpop.f32.mrf.mxu1 }
 0x14c   : > { %v1375_v54 = vadd.f32 %v2455_v39, %v1169_v50  ;;  %v1818_v55 = vadd.f32 %v1817_v53, %v1816_v49  ;;  %v1707_v56 = vpop.f32.mrf.mxu0 }
 0x14d   : > { %v1819_v57 = vpop.f32.mrf.mxu1 }
 0x14e   : > { %1407 = vst [vmem:[%s2458_s29 + $0x48] sm:$0xff] %v1375_v54  ;;  %v1174_v58 = vadd.f32 %v1818_v55, %v1706_v52  ;;  %v1708_v59 = vpop.f32.mrf.mxu0 }
 0x14f   : > { %v1709_v60 = vadd.f32 %v1708_v59, %v1707_v56  ;;  %v1820_v61 = vpop.f32.mrf.mxu1 }
 0x150   : > { %v1376_v62 = vadd.f32 %v2455_v39, %v1174_v58  ;;  %v1821_v63 = vadd.f32 %v1820_v61, %v1819_v57  ;;  %v1710_v0 = vpop.f32.mrf.mxu0 }
 0x151   : > { %v1822_v1 = vpop.f32.mrf.mxu1 }
 0x152   : > { %1408 = vst [vmem:[%s2458_s29 + $0x50] sm:$0xff] %v1376_v62  ;;  %v1177_v2 = vadd.f32 %v1821_v63, %v1709_v60  ;;  %v1711_v3 = vpop.f32.mrf.mxu0 }
 0x153   : > { %v1712_v4 = vadd.f32 %v1711_v3, %v1710_v0  ;;  %v1823_v5 = vpop.f32.mrf.mxu1 }
 0x154   : > { %v1377_v6 = vadd.f32 %v2455_v39, %v1177_v2  ;;  %v1824_v7 = vadd.f32 %v1823_v5, %v1822_v1  ;;  %v1713_v8 = vpop.f32.mrf.mxu0 }
 0x155   : > { %v1825_v9 = vpop.f32.mrf.mxu1 }
 0x156   : > { %1409 = vst [vmem:[%s2458_s29 + $0x58] sm:$0xff] %v1377_v6  ;;  %v1182_v10 = vadd.f32 %v1824_v7, %v1712_v4  ;;  %v1714_v11 = vpop.f32.mrf.mxu0 }
 0x157   : > { %v1715_v12 = vadd.f32 %v1714_v11, %v1713_v8  ;;  %v1826_v13 = vpop.f32.mrf.mxu1 }
 0x158   : > { %v1378_v14 = vadd.f32 %v2455_v39, %v1182_v10  ;;  %v1827_v15 = vadd.f32 %v1826_v13, %v1825_v9  ;;  %v1716_v16 = vpop.f32.mrf.mxu0 }
 0x159   : > { %v1828_v17 = vpop.f32.mrf.mxu1 }
 0x15a   : > { %1410 = vst [vmem:[%s2458_s29 + $0x60] sm:$0xff] %v1378_v14  ;;  %v1185_v18 = vadd.f32 %v1827_v15, %v1715_v12  ;;  %v1717_v19 = vpop.f32.mrf.mxu0 }
 0x15b   : > { %v1718_v20 = vadd.f32 %v1717_v19, %v1716_v16  ;;  %v1829_v21 = vpop.f32.mrf.mxu1 }
 0x15c   : > { %v1379_v22 = vadd.f32 %v2455_v39, %v1185_v18  ;;  %v1830_v23 = vadd.f32 %v1829_v21, %v1828_v17  ;;  %v1719_v24 = vpop.f32.mrf.mxu0 }
 0x15d   : > { %v1831_v25 = vpop.f32.mrf.mxu1 }
 0x15e   : > { %1411 = vst [vmem:[%s2458_s29 + $0x68] sm:$0xff] %v1379_v22  ;;  %v1190_v26 = vadd.f32 %v1830_v23, %v1718_v20  ;;  %v1720_v27 = vpop.f32.mrf.mxu0 }
 0x15f   : > { %v1721_v28 = vadd.f32 %v1720_v27, %v1719_v24  ;;  %v1832_v29 = vpop.f32.mrf.mxu1 }
 0x160   : > { %v1380_v30 = vadd.f32 %v2455_v39, %v1190_v26  ;;  %v1833_v31 = vadd.f32 %v1832_v29, %v1831_v25  ;;  %v1722_v32 = vpop.f32.mrf.mxu0 }
 0x161   : > { %v1834_v33 = vpop.f32.mrf.mxu1 }
 0x162   : > { %1412 = vst [vmem:[%s2458_s29 + $0x70] sm:$0xff] %v1380_v30  ;;  %v1193_v34 = vadd.f32 %v1833_v31, %v1721_v28  ;;  %v1723_v35 = vpop.f32.mrf.mxu0 }
 0x163   : > { %v1724_v36 = vadd.f32 %v1723_v35, %v1722_v32  ;;  %v1835_v37 = vpop.f32.mrf.mxu1 }
 0x164   : > { %v1381_v38 = vadd.f32 %v2455_v39, %v1193_v34  ;;  %v1836_v40 = vadd.f32 %v1835_v37, %v1834_v33  ;;  %v1725_v41 = vpop.f32.mrf.mxu0 }
 0x165   : > { %v1837_v42 = vpop.f32.mrf.mxu1 }
 0x166   : > { %1413 = vst [vmem:[%s2458_s29 + $0x78] sm:$0xff] %v1381_v38  ;;  %v1198_v43 = vadd.f32 %v1836_v40, %v1724_v36  ;;  %v1726_v44 = vpop.f32.mrf.mxu0 }
 0x167   : > { %v1727_v45 = vadd.f32 %v1726_v44, %v1725_v41  ;;  %v1838_v46 = vpop.f32.mrf.mxu1 }
 0x168   : > { %v1382_v47 = vadd.f32 %v2455_v39, %v1198_v43  ;;  %v1839_v48 = vadd.f32 %v1838_v46, %v1837_v42  ;;  %v1728_v49 = vpop.f32.mrf.mxu0 }
 0x169   : > { %v1840_v50 = vpop.f32.mrf.mxu1 }
 0x16a   : > { %1414 = vst [vmem:[%s2458_s29 + $0x80] sm:$0xff] %v1382_v47  ;;  %v1201_v51 = vadd.f32 %v1839_v48, %v1727_v45  ;;  %v1729_v52 = vpop.f32.mrf.mxu0 }
 0x16b   : > { %v1730_v53 = vadd.f32 %v1729_v52, %v1728_v49  ;;  %v1841_v54 = vpop.f32.mrf.mxu1 }
 0x16c   : > { %v1383_v55 = vadd.f32 %v2455_v39, %v1201_v51  ;;  %v1842_v56 = vadd.f32 %v1841_v54, %v1840_v50  ;;  %v1731_v57 = vpop.f32.mrf.mxu0 }
 0x16d   : > { %v1843_v58 = vpop.f32.mrf.mxu1 }
 0x16e   : > { %1415 = vst [vmem:[%s2458_s29 + $0x88] sm:$0xff] %v1383_v55  ;;  %v1206_v59 = vadd.f32 %v1842_v56, %v1730_v53  ;;  %v1732_v60 = vpop.f32.mrf.mxu0 }
 0x16f   : > { %v1733_v61 = vadd.f32 %v1732_v60, %v1731_v57  ;;  %v1844_v62 = vpop.f32.mrf.mxu1 }
 0x170   : > { %v1384_v63 = vadd.f32 %v2455_v39, %v1206_v59  ;;  %v1845_v0 = vadd.f32 %v1844_v62, %v1843_v58  ;;  %v1734_v1 = vpop.f32.mrf.mxu0 }
 0x171   : > { %v1846_v2 = vpop.f32.mrf.mxu1 }
 0x172   : > { %1416 = vst [vmem:[%s2458_s29 + $0x90] sm:$0xff] %v1384_v63  ;;  %v1209_v3 = vadd.f32 %v1845_v0, %v1733_v61  ;;  %v1735_v4 = vpop.f32.mrf.mxu0 }
 0x173   : > { %v1736_v5 = vadd.f32 %v1735_v4, %v1734_v1  ;;  %v1847_v6 = vpop.f32.mrf.mxu1 }
 0x174   : > { %v1385_v7 = vadd.f32 %v2455_v39, %v1209_v3  ;;  %v1848_v8 = vadd.f32 %v1847_v6, %v1846_v2  ;;  %v1737_v9 = vpop.f32.mrf.mxu0 }
 0x175   : > { %v1849_v10 = vpop.f32.mrf.mxu1 }
 0x176   : > { %1417 = vst [vmem:[%s2458_s29 + $0x98] sm:$0xff] %v1385_v7  ;;  %v1214_v11 = vadd.f32 %v1848_v8, %v1736_v5  ;;  %v1738_v12 = vpop.f32.mrf.mxu0 }
 0x177   : > { %v1739_v13 = vadd.f32 %v1738_v12, %v1737_v9  ;;  %v1850_v14 = vpop.f32.mrf.mxu1 }
 0x178   : > { %v1386_v15 = vadd.f32 %v2455_v39, %v1214_v11  ;;  %v1851_v16 = vadd.f32 %v1850_v14, %v1849_v10  ;;  %v1740_v17 = vpop.f32.mrf.mxu0 }
 0x179   : > { %v1852_v18 = vpop.f32.mrf.mxu1 }
 0x17a   : > { %1418 = vst [vmem:[%s2458_s29 + $0xa0] sm:$0xff] %v1386_v15  ;;  %v1217_v19 = vadd.f32 %v1851_v16, %v1739_v13  ;;  %v1741_v20 = vpop.f32.mrf.mxu0 }
 0x17b   : > { %v1742_v21 = vadd.f32 %v1741_v20, %v1740_v17  ;;  %v1853_v22 = vpop.f32.mrf.mxu1 }
 0x17c   : > { %v1387_v23 = vadd.f32 %v2455_v39, %v1217_v19  ;;  %v1854_v24 = vadd.f32 %v1853_v22, %v1852_v18  ;;  %v1743_v25 = vpop.f32.mrf.mxu0 }
 0x17d   : > { %v1855_v26 = vpop.f32.mrf.mxu1 }
 0x17e   : > { %1419 = vst [vmem:[%s2458_s29 + $0xa8] sm:$0xff] %v1387_v23  ;;  %v1222_v27 = vadd.f32 %v1854_v24, %v1742_v21  ;;  %v1744_v28 = vpop.f32.mrf.mxu0 }
 0x17f   : > { %v1745_v29 = vadd.f32 %v1744_v28, %v1743_v25  ;;  %v1856_v30 = vpop.f32.mrf.mxu1 }
 0x180   : > { %v1388_v31 = vadd.f32 %v2455_v39, %v1222_v27  ;;  %v1857_v32 = vadd.f32 %v1856_v30, %v1855_v26  ;;  %v1746_v33 = vpop.f32.mrf.mxu0 }
 0x181   : > { %v1858_v34 = vpop.f32.mrf.mxu1 }
 0x182   : > { %1420 = vst [vmem:[%s2458_s29 + $0xb0] sm:$0xff] %v1388_v31  ;;  %v1225_v35 = vadd.f32 %v1857_v32, %v1745_v29  ;;  %v1747_v36 = vpop.f32.mrf.mxu0 }
 0x183   : > { %v1748_v37 = vadd.f32 %v1747_v36, %v1746_v33  ;;  %v1859_v38 = vpop.f32.mrf.mxu1 }
 0x184   : > { %v1389_v40 = vadd.f32 %v2455_v39, %v1225_v35  ;;  %v1860_v41 = vadd.f32 %v1859_v38, %v1858_v34  ;;  %v1749_v42 = vpop.f32.mrf.mxu0 }
 0x185   : > { %v1861_v43 = vpop.f32.mrf.mxu1 }
 0x186   : > { %1421 = vst [vmem:[%s2458_s29 + $0xb8] sm:$0xff] %v1389_v40  ;;  %v1230_v44 = vadd.f32 %v1860_v41, %v1748_v37  ;;  %v1750_v45 = vpop.f32.mrf.mxu0 }
 0x187   : > { %v1751_v46 = vadd.f32 %v1750_v45, %v1749_v42  ;;  %v1862_v47 = vpop.f32.mrf.mxu1 }
 0x188   : > { %v1390_v48 = vadd.f32 %v2455_v39, %v1230_v44  ;;  %v1863_v49 = vadd.f32 %v1862_v47, %v1861_v43  ;;  %v1752_v50 = vpop.f32.mrf.mxu0 }
 0x189   : > { %v1864_v51 = vpop.f32.mrf.mxu1 }
 0x18a   : > { %1422 = vst [vmem:[%s2458_s29 + $0xc0] sm:$0xff] %v1390_v48  ;;  %v1233_v52 = vadd.f32 %v1863_v49, %v1751_v46  ;;  %v1753_v53 = vpop.f32.mrf.mxu0 }
 0x18b   : > { %v1754_v54 = vadd.f32 %v1753_v53, %v1752_v50  ;;  %v1865_v55 = vpop.f32.mrf.mxu1 }
 0x18c   : > { %v1391_v56 = vadd.f32 %v2455_v39, %v1233_v52  ;;  %v1866_v57 = vadd.f32 %v1865_v55, %v1864_v51  ;;  %v1755_v58 = vpop.f32.mrf.mxu0 }
 0x18d   : > { %v1867_v59 = vpop.f32.mrf.mxu1 }
 0x18e   : > { %1423 = vst [vmem:[%s2458_s29 + $0xc8] sm:$0xff] %v1391_v56  ;;  %v1238_v60 = vadd.f32 %v1866_v57, %v1754_v54  ;;  %v1756_v61 = vpop.f32.mrf.mxu0 }
 0x18f   : > { %v1757_v62 = vadd.f32 %v1756_v61, %v1755_v58  ;;  %v1868_v63 = vpop.f32.mrf.mxu1 }
 0x190   : > { %v1392_v0 = vadd.f32 %v2455_v39, %v1238_v60  ;;  %v1869_v1 = vadd.f32 %v1868_v63, %v1867_v59  ;;  %v1758_v2 = vpop.f32.mrf.mxu0 }
 0x191   : > { %v1870_v3 = vpop.f32.mrf.mxu1 }
 0x192   : > { %1424 = vst [vmem:[%s2458_s29 + $0xd0] sm:$0xff] %v1392_v0  ;;  %v1241_v4 = vadd.f32 %v1869_v1, %v1757_v62  ;;  %v1759_v5 = vpop.f32.mrf.mxu0 }
 0x193   : > { %v1760_v6 = vadd.f32 %v1759_v5, %v1758_v2  ;;  %v1871_v7 = vpop.f32.mrf.mxu1 }
 0x194   : > { %v1393_v8 = vadd.f32 %v2455_v39, %v1241_v4  ;;  %v1872_v9 = vadd.f32 %v1871_v7, %v1870_v3  ;;  %v1761_v10 = vpop.f32.mrf.mxu0 }
 0x195   : > { %v1873_v11 = vpop.f32.mrf.mxu1 }
 0x196   : > { %1425 = vst [vmem:[%s2458_s29 + $0xd8] sm:$0xff] %v1393_v8  ;;  %v1246_v12 = vadd.f32 %v1872_v9, %v1760_v6  ;;  %v1762_v13 = vpop.f32.mrf.mxu0 }
 0x197   : > { %v1763_v14 = vadd.f32 %v1762_v13, %v1761_v10  ;;  %v1874_v15 = vpop.f32.mrf.mxu1 }
 0x198   : > { %v1394_v16 = vadd.f32 %v2455_v39, %v1246_v12  ;;  %v1875_v17 = vadd.f32 %v1874_v15, %v1873_v11  ;;  %v1764_v18 = vpop.f32.mrf.mxu0 }
 0x199   : > { %v1876_v19 = vpop.f32.mrf.mxu1 }
 0x19a   : > { %1426 = vst [vmem:[%s2458_s29 + $0xe0] sm:$0xff] %v1394_v16  ;;  %v1249_v20 = vadd.f32 %v1875_v17, %v1763_v14  ;;  %v1765_v21 = vpop.f32.mrf.mxu0 }
 0x19b   : > { %v1766_v22 = vadd.f32 %v1765_v21, %v1764_v18  ;;  %v1877_v23 = vpop.f32.mrf.mxu1 }
 0x19c   : > { %v1395_v24 = vadd.f32 %v2455_v39, %v1249_v20  ;;  %v1878_v25 = vadd.f32 %v1877_v23, %v1876_v19  ;;  %v1767_v26 = vpop.f32.mrf.mxu0 }
 0x19d   : > { %v1879_v27 = vpop.f32.mrf.mxu1 }
 0x19e   : > { %1427 = vst [vmem:[%s2458_s29 + $0xe8] sm:$0xff] %v1395_v24  ;;  %v1254_v28 = vadd.f32 %v1878_v25, %v1766_v22  ;;  %v1768_v29 = vpop.f32.mrf.mxu0 }
 0x19f   : > { %v1769_v30 = vadd.f32 %v1768_v29, %v1767_v26  ;;  %v1880_v31 = vpop.f32.mrf.mxu1 }
 0x1a0   : > { %v1396_v32 = vadd.f32 %v2455_v39, %v1254_v28  ;;  %v1881_v33 = vadd.f32 %v1880_v31, %v1879_v27 }
 0x1a2   : > { %1428 = vst [vmem:[%s2458_s29 + $0xf0] sm:$0xff] %v1396_v32  ;;  %v1257_v34 = vadd.f32 %v1881_v33, %v1769_v30 }
 0x1a4   : > { %v1397_v35 = vadd.f32 %v2455_v39, %v1257_v34 }
 0x1a6   : > { %1429 = vst [vmem:[%s2458_s29 + $0xf8] sm:$0xff] %v1397_v35 }
 0x1a7   : > { %2156 = shalt.err (!%p2153_p5)
}
 0x1a8   : > { %s2157_s26 = scalar_lea.hbm %s2526_s7, 4096  ;;  %s2161_s20 = scalar_lea.hbm %s2581_s3, 8192 }
 0x1a9   : > { %p2158_p7 = scmp.ne.s32.totalorder %s2526_s7, %s2157_s26  ;;  %p2162_p9 = scmp.lt.s32.totalorder %s2526_s7, %s2581_s3 }
 0x1aa   : > { %p2163_p11 = scmp.lt.s32.totalorder %s2161_s20, %s2157_s26 }
 0x1ab   : > { %p2159_p6 = pnand %p2158_p7, %p2345_p13 }
 0x1ac   : > { %p2164_p12 = por %p2163_p11, %p2162_p9 }
 0x1ad   : > { %p2160_p4 = pneg %p2159_p6 }
 0x1af   : > { %p2165_p1 = pnand %p2164_p12, %p2160_p4 }
 0x1b1   : > { %2168 = shalt.err (!%p2165_p1)
}
 0x1b2   : > { %s2236_s29 = smov 128   ;;  %s2237_s4 = smov 8  }
 0x1b3   : > { %1888 = dma.vmem_to_hbm [thread:$0]  (%p2345_p13), %s2528_s21, 4096, %s2526_s7, %s1431_s10, %s2236_s29, %s2236_s29, %s2237_s4  }
 0x1b4 PF: > { %s1459_s5 = sand.u32 1, %s2207_s12   ;;  %p2593_p8 = scmp.ne.s32.totalorder %s2586_s23, 0 }
 0x1b5   : > { %p2594_p10 = scmp.ge.s32.totalorder %s2227_s17, 2  ;;  %s1460_s6 = scalar_lea.sflag [#allocation5], %s1459_s5 }
 0x1b7   : > { %p1899_p0 = pnand %p2594_p10, %p2593_p8 }
 0x1b9   : > { %p1900_p2 = pneg %p1899_p0 }
 0x1bb   : > { %2202 = dma.done.wait (%p1900_p2), %s1460_s6, 4096  }
 0x1bc   : > { %2204 = vsyncadd (%p1900_p2), %s1460_s6, 4294963200  ;;  %s20_s17 = sadd.s32 1, %s2227_s17   ;;  %s2595_s12 = smov %s2211_s13 }
 0x1bd   : > { %p17_p3 = scmp.ge.s32.totalorder %s20_s17, 4   ;;  %s2596_s13 = smov %s2215_s14 }
 0x1be   : > { %s2597_s14 = smov %s2354_s19  ;;  %s2598_s15 = smov %s2223_s16 }
 0x1bf   : > { %s2599_s16 = smov %s2601_s28  ;;  %19 = sbr.rel (!%p17_p3) target bundleno = 7 (0x7), region = 90 }
 0x1c4   :  { %1465 = vsyncpa [#allocation4], 1 }
 0x1c5   :  { %1467 = vsyncpa [#allocation4 + $0x1], 1 }
 0x1c6   :  { %1468 = vsyncpa [#allocation7], 1 }
 0x1c7   :  { %1469 = vsyncpa [#allocation5], 1 }
 0x1c8   :  { %1471 = vsyncpa [#allocation5 + $0x1], 1 }

</bundles_post_ra>
